<compile_context>
chip_gen: v5e
topology: v5e:2x2
jax: 0.10.0
libtpu: 0.0.40
codegen_flags: <defaults>
</compile_context>

<pallas_src>
import functools
import math

import jax
import jax.numpy as jnp
from jax.experimental import pallas as pl
from jax.experimental.pallas import tpu as pltpu

LANE = 128       # output-dim padding granularity (full-lane stores)
ROW_ALIGN = 16   # bf16 sublane packing
ROW_TILE_CAP = 1024


def _round_up(x, m):
    return ((x + m - 1) // m) * m


def _mlp_heads_kernel(*refs, num_layers, sigmoid_output):
    """One grid step = one (head, row-tile) pair.

    refs = (x_ref, w0, b0, ..., w_{L-1}, b_{L-1}, o_ref)
      x_ref : (1, tm, K0)    f32 input rows for this head
      w_i   : (1, K_i, N_i)  bf16 weight, (in, out) layout, lane-padded N_i
      b_i   : (1, 1,  N_i)   f32 bias, lane-padded
      o_ref : (1, tm, N_L)   output rows (N_L multiple of 128 -> unmasked vst)
    Intermediates never leave VMEM/vregs; only the final result hits HBM.
    """
    x_ref = refs[0]
    o_ref = refs[-1]
    wb = refs[1:-1]

    # In-kernel f32 -> bf16 cast (VPU, hidden under DMA/MXU).
    y = x_ref[0].astype(jnp.bfloat16)
    for i in range(num_layers):
        w = wb[2 * i][0]          # (K_i, N_i) bf16
        b = wb[2 * i + 1][0]      # (1, N_i)  f32
        y = jnp.dot(y, w, preferred_element_type=jnp.float32) + b   # MXU, f32 acc
        if i < num_layers - 1:
            y = jnp.maximum(y, 0.0).astype(jnp.bfloat16)            # VPU
    if sigmoid_output:
        y = jax.nn.sigmoid(y)                                        # EUP
    o_ref[0] = y.astype(o_ref.dtype)


def fused_mlp_heads_forward(x_hmk, weights, biases, *, sigmoid_output,
                            n_out_true, out_dtype=jnp.float32):
    """Run H identically-shaped MLPs (different weights) in one pallas_call.

    x_hmk      : (H, M, K0) f32
    weights[l] : (H, K_l, N_l) bf16, lane-padded N_l (multiple of 128)
    biases[l]  : (H, 1, N_l)  f32, lane-padded
    Returns (H, M, n_out_true) in out_dtype.
    """
    H, M, K0 = x_hmk.shape
    num_layers = len(weights)

    # Row-tile policy: multiples of 16, cap 1024; split M evenly across
    # ceil(M/cap) tiles so padding is always < 1 tile.
    num_tiles = max(1, -(-M // ROW_TILE_CAP))
    tm = _round_up(-(-M // num_tiles), ROW_ALIGN)
    M_pad = _round_up(M, tm)
    if M_pad != M:
        x_hmk = jnp.pad(x_hmk, ((0, 0), (0, M_pad - M), (0, 0)))

    N_last = weights[-1].shape[-1]

    in_specs = [pl.BlockSpec((1, tm, K0), lambda h, i: (h, i, 0))]
    operands = [x_hmk]
    flops = 0
    bytes_accessed = x_hmk.size * x_hmk.dtype.itemsize
    for w, b in zip(weights, biases):
        _, K, N = w.shape
        # Per-head weight/bias blocks; constant over the row grid so they are
        # DMA'd once per head and stay resident in VMEM.
        in_specs.append(pl.BlockSpec((1, K, N), lambda h, i: (h, 0, 0)))
        in_specs.append(pl.BlockSpec((1, 1, N), lambda h, i: (h, 0, 0)))
        operands += [w, b]
        flops += 2 * H * M_pad * K * N
        bytes_accessed += w.size * w.dtype.itemsize + b.size * b.dtype.itemsize
    bytes_accessed += H * M_pad * N_last * jnp.dtype(out_dtype).itemsize
    transcendentals = H * M_pad * N_last if sigmoid_output else 0

    out = pl.pallas_call(
        functools.partial(_mlp_heads_kernel, num_layers=num_layers,
                          sigmoid_output=sigmoid_output),
        out_shape=jax.ShapeDtypeStruct((H, M_pad, N_last), out_dtype),
        grid_spec=pltpu.PrefetchScalarGridSpec(
            num_scalar_prefetch=0,
            grid=(H, M_pad // tm),
            in_specs=in_specs,
            # N_last is a multiple of 128 -> lane-dense (unmasked) stores.
            out_specs=pl.BlockSpec((1, tm, N_last), lambda h, i: (h, i, 0)),
        ),
        compiler_params=pltpu.CompilerParams(
            # Head axis and row axis are independent; on v7x the head axis
            # gives the second TensorCore work even when M is tiny.
            dimension_semantics=("parallel", "parallel"),
        ),
        cost_estimate=pl.CostEstimate(
            flops=flops,
            transcendentals=transcendentals,
            bytes_accessed=bytes_accessed,
        ),
    )(*operands)

    return out[:, :M, :n_out_true]


def _init_torch_linear(key, n_in, n_out):
    """PyTorch nn.Linear default init: U(-1/sqrt(n_in), 1/sqrt(n_in))."""
    kw, kb = jax.random.split(key)
    bound = 1.0 / math.sqrt(n_in)
    w = jax.random.uniform(kw, (n_out, n_in), jnp.float32, -bound, bound)
    b = jax.random.uniform(kb, (n_out,), jnp.float32, -bound, bound)
    return w, b


def _pack_heads(raw_weights, raw_biases):
    """raw_weights[h][l]: (n_out, n_in) f32 (PyTorch layout);
    raw_biases[h][l]: (n_out,) f32.
    Returns per-layer stacked, lane-padded operands:
      weights[l]: (H, K_l, N_l_pad) bf16 ; biases[l]: (H, 1, N_l_pad) f32.
    Zero padding of output columns + matching next-layer input rows keeps the
    forward pass numerically identical."""
    H = len(raw_weights)
    L = len(raw_weights[0])
    ws, bs = [], []
    prev_pad = 0
    for l in range(L):
        w = jnp.stack([raw_weights[h][l].T for h in range(H)], axis=0)  # (H,K,N)
        b = jnp.stack([raw_biases[h][l] for h in range(H)], axis=0)     # (H,N)
        _, K, N = w.shape
        n_pad = _round_up(N, LANE) - N
        w = jnp.pad(w, ((0, 0), (0, prev_pad), (0, n_pad)))
        b = jnp.pad(b, ((0, 0), (0, n_pad))).reshape(H, 1, N + n_pad)
        ws.append(w.astype(jnp.bfloat16))
        bs.append(b.astype(jnp.float32))
        prev_pad = n_pad
    return ws, bs


class StackedMLPPallas:
    """`num_heads` independent, identically-shaped PyTorch `MLP`s fused into a
    single Pallas kernel (the MaskDecoder hypernetwork heads).

    __call__ : x (batch, num_heads, input_dim) -> (batch, num_heads, output_dim)
    (equivalent to torch.stack([mlp_h(x[:, h]) for h in heads], dim=1))."""

    def __init__(self, num_heads, input_dim, hidden_dim, output_dim, num_layers,
                 sigmoid_output=False, key=None):
        self.num_heads = num_heads
        self.num_layers = num_layers
        self.output_dim = output_dim
        self.sigmoid_output = sigmoid_output
        h = [hidden_dim] * (num_layers - 1)
        dims = list(zip([input_dim] + h, h + [output_dim]))
        if key is None:
            key = jax.random.PRNGKey(0)
        self.raw_weights, self.raw_biases = [], []   # f32 PyTorch layout (reference)
        for _ in range(num_heads):
            wl, bl = [], []
            for (n_in, n_out) in dims:
                key, sub = jax.random.split(key)
                w, b = _init_torch_linear(sub, n_in, n_out)
                wl.append(w)
                bl.append(b)
            self.raw_weights.append(wl)
            self.raw_biases.append(bl)
        self.weights, self.biases = _pack_heads(self.raw_weights, self.raw_biases)

    def __call__(self, x):
        # x: (batch, num_heads, input_dim) -> head-major layout for the kernel.
        x_hmk = jnp.transpose(x, (1, 0, 2)).astype(jnp.float32)
        out = fused_mlp_heads_forward(
            x_hmk, self.weights, self.biases,
            sigmoid_output=self.sigmoid_output, n_out_true=self.output_dim)
        return jnp.transpose(out, (1, 0, 2))   # (batch, num_heads, output_dim)


class MLPPallas(StackedMLPPallas):
    """Single PyTorch `MLP` (e.g. the IoU prediction head) as one fused Pallas
    call; __call__ accepts x of shape (..., input_dim)."""

    def __init__(self, input_dim, hidden_dim, output_dim, num_layers,
                 sigmoid_output=False, key=None):
        super().__init__(1, input_dim, hidden_dim, output_dim, num_layers,
                         sigmoid_output=sigmoid_output, key=key)

    def __call__(self, x):
        orig_shape = x.shape
        x_hmk = x.reshape(1, -1, orig_shape[-1]).astype(jnp.float32)
        out = fused_mlp_heads_forward(
            x_hmk, self.weights, self.biases,
            sigmoid_output=self.sigmoid_output, n_out_true=self.output_dim)
        return out[0].reshape(*orig_shape[:-1], self.output_dim)


# ----------------------------- pure-JAX reference ---------------------------

def _reference_mlp(weights, biases, x, sigmoid_output):
    """Same bf16-operand / f32-accum recipe as the kernel (documented
    divergence from a pure-f32 PyTorch MLP)."""
    y = x
    L = len(weights)
    for l in range(L):
        y = jnp.dot(y.astype(jnp.bfloat16), weights[l].T.astype(jnp.bfloat16),
                    preferred_element_type=jnp.float32) + biases[l]
        if l < L - 1:
            y = jnp.maximum(y, 0.0)
    if sigmoid_output:
        y = jax.nn.sigmoid(y)
    return y


def _reference_stacked(mlp, x):
    outs = [_reference_mlp(mlp.raw_weights[h], mlp.raw_biases[h], x[:, h, :],
                           mlp.sigmoid_output)
            for h in range(mlp.num_heads)]
    return jnp.stack(outs, axis=1)


def _reference_single(mlp, x):
    orig_shape = x.shape
    y = _reference_mlp(mlp.raw_weights[0], mlp.raw_biases[0],
                       x.reshape(-1, orig_shape[-1]), mlp.sigmoid_output)
    return y.reshape(*orig_shape[:-1], mlp.output_dim)


if __name__ == "__main__":
    key = jax.random.PRNGKey(0)
    k_x1, k_x2, k_x3, k_x4, k_p1, k_p2, k_p3 = jax.random.split(key, 7)

    # Small MaskDecoder-consistent config: transformer_dim=32,
    # num_mask_tokens = num_multimask_outputs + 1 = 4, batch=2.
    transformer_dim, num_mask_tokens, batch = 32, 4, 2

    # 4 hypernetwork MLPs (dim -> dim -> dim//8, 3 layers) fused into ONE kernel.
    hyper_mlps = StackedMLPPallas(num_mask_tokens, transformer_dim,
                                  transformer_dim, transformer_dim // 8, 3,
                                  key=k_p1)
    # IoU prediction head (dim -> hidden -> num_mask_tokens, depth 3).
    iou_head = MLPPallas(transformer_dim, 32, num_mask_tokens, 3, key=k_p2)
    # Sigmoid-output variant to exercise the other epilogue path.
    sig_mlp = MLPPallas(transformer_dim, 32, 16, 3, sigmoid_output=True, key=k_p3)

    mask_tokens_out = jax.random.normal(
        k_x1, (batch, num_mask_tokens, transformer_dim), jnp.float32)
    iou_token_out = jax.random.normal(k_x2, (batch, transformer_dim), jnp.float32)
    x_sig = jax.random.normal(k_x3, (batch, 8, transformer_dim), jnp.float32)
    x_big = jax.random.normal(k_x4, (3, 370, transformer_dim), jnp.float32)  # multi-tile rows

    hyper_in = jax.block_until_ready(hyper_mlps(mask_tokens_out))
    iou_pred = jax.block_until_ready(iou_head(iou_token_out))
    out_sig = jax.block_until_ready(sig_mlp(x_sig))
    out_big = jax.block_until_ready(iou_head(x_big))

    ref_hyper = jax.block_until_ready(_reference_stacked(hyper_mlps, mask_tokens_out))
    ref_iou = jax.block_until_ready(_reference_single(iou_head, iou_token_out))
    ref_sig = jax.block_until_ready(_reference_single(sig_mlp, x_sig))
    ref_big = jax.block_until_ready(_reference_single(iou_head, x_big))

    assert hyper_in.shape == (batch, num_mask_tokens, transformer_dim // 8), hyper_in.shape
    assert iou_pred.shape == (batch, num_mask_tokens), iou_pred.shape
    assert out_sig.shape == (batch, 8, 16), out_sig.shape
    assert out_big.shape == (3, 370, num_mask_tokens), out_big.shape
    assert jnp.allclose(hyper_in, ref_hyper, atol=2e-2, rtol=2e-2), "mismatch (hypernet heads)"
    assert jnp.allclose(iou_pred, ref_iou, atol=2e-2, rtol=2e-2), "mismatch (iou head)"
    assert jnp.allclose(out_sig, ref_sig, atol=2e-2, rtol=2e-2), "mismatch (sigmoid)"
    assert jnp.allclose(out_big, ref_big, atol=2e-2, rtol=2e-2), "mismatch (multi-tile rows)"

    print("KERNEL_OK")
</pallas_src>

<mosaic_0001>
module attributes {stable_mosaic.version = 11 : i64} {
  func.func @_mlp_heads_kernel(%arg0: i32, %arg1: i32, %arg2: memref<1x16x32xf32, #tpu.memory_space<vmem>>, %arg3: memref<1x32x128xbf16, #tpu.memory_space<vmem>>, %arg4: memref<1x1x128xf32, #tpu.memory_space<vmem>>, %arg5: memref<1x128x128xbf16, #tpu.memory_space<vmem>>, %arg6: memref<1x1x128xf32, #tpu.memory_space<vmem>>, %arg7: memref<1x128x128xbf16, #tpu.memory_space<vmem>>, %arg8: memref<1x1x128xf32, #tpu.memory_space<vmem>>, %arg9: memref<1x16x128xf32, #tpu.memory_space<vmem>>) attributes {dimension_semantics = [#tpu.dimension_semantics<parallel>, #tpu.dimension_semantics<parallel>], iteration_bounds = array<i64: 4, 1>, scalar_prefetch = 0 : i64, scratch_operands = 0 : i64, tpu.core_type = #tpu.core_type<tc>, window_params = [{transform_indices = @transform_0, window_bounds = array<i64: 1, 16, 32>}, {transform_indices = @transform_1, window_bounds = array<i64: 1, 32, 128>}, {transform_indices = @transform_2, window_bounds = array<i64: 1, 1, 128>}, {transform_indices = @transform_3, window_bounds = array<i64: 1, 128, 128>}, {transform_indices = @transform_4, window_bounds = array<i64: 1, 1, 128>}, {transform_indices = @transform_5, window_bounds = array<i64: 1, 128, 128>}, {transform_indices = @transform_6, window_bounds = array<i64: 1, 1, 128>}, {transform_indices = @transform_7, window_bounds = array<i64: 1, 16, 128>}]} {
    %c0 = arith.constant 0 : index
    %c0_0 = arith.constant 0 : index
    %c0_1 = arith.constant 0 : index
    %0 = vector.load %arg2[%c0, %c0_0, %c0_1] : memref<1x16x32xf32, #tpu.memory_space<vmem>>, vector<1x16x32xf32>
    %1 = vector.shape_cast %0 : vector<1x16x32xf32> to vector<16x32xf32>
    %2 = arith.truncf %1 : vector<16x32xf32> to vector<16x32xbf16>
    %c0_2 = arith.constant 0 : index
    %c0_3 = arith.constant 0 : index
    %c0_4 = arith.constant 0 : index
    %3 = vector.load %arg3[%c0_2, %c0_3, %c0_4] : memref<1x32x128xbf16, #tpu.memory_space<vmem>>, vector<1x32x128xbf16>
    %4 = vector.shape_cast %3 : vector<1x32x128xbf16> to vector<32x128xbf16>
    %c0_5 = arith.constant 0 : index
    %c0_6 = arith.constant 0 : index
    %c0_7 = arith.constant 0 : index
    %5 = vector.load %arg4[%c0_5, %c0_6, %c0_7] : memref<1x1x128xf32, #tpu.memory_space<vmem>>, vector<1x1x128xf32>
    %6 = vector.shape_cast %5 : vector<1x1x128xf32> to vector<1x128xf32>
    %cst = arith.constant dense<0.000000e+00> : vector<16x128xf32>
    %7 = tpu.matmul %2, %4, %cst {dimension_numbers = #tpu.dot_dimension_numbers<[1], [0], [0], [1], [0, 0, 1, 1], [], []>} : vector<16x32xbf16>, vector<32x128xbf16>, vector<16x128xf32> -> vector<16x128xf32>
    %8 = vector.broadcast %6 : vector<1x128xf32> to vector<16x128xf32>
    %9 = arith.addf %7, %8 : vector<16x128xf32>
    %cst_8 = arith.constant 0.000000e+00 : f32
    %10 = vector.broadcast %cst_8 : f32 to vector<16x128xf32>
    %11 = arith.maximumf %9, %10 : vector<16x128xf32>
    %12 = arith.truncf %11 : vector<16x128xf32> to vector<16x128xbf16>
    %c0_9 = arith.constant 0 : index
    %c0_10 = arith.constant 0 : index
    %c0_11 = arith.constant 0 : index
    %13 = vector.load %arg5[%c0_9, %c0_10, %c0_11] : memref<1x128x128xbf16, #tpu.memory_space<vmem>>, vector<1x128x128xbf16>
    %14 = vector.shape_cast %13 : vector<1x128x128xbf16> to vector<128x128xbf16>
    %c0_12 = arith.constant 0 : index
    %c0_13 = arith.constant 0 : index
    %c0_14 = arith.constant 0 : index
    %15 = vector.load %arg6[%c0_12, %c0_13, %c0_14] : memref<1x1x128xf32, #tpu.memory_space<vmem>>, vector<1x1x128xf32>
    %16 = vector.shape_cast %15 : vector<1x1x128xf32> to vector<1x128xf32>
    %cst_15 = arith.constant dense<0.000000e+00> : vector<16x128xf32>
    %17 = tpu.matmul %12, %14, %cst_15 {dimension_numbers = #tpu.dot_dimension_numbers<[1], [0], [0], [1], [0, 0, 1, 1], [], []>} : vector<16x128xbf16>, vector<128x128xbf16>, vector<16x128xf32> -> vector<16x128xf32>
    %18 = vector.broadcast %16 : vector<1x128xf32> to vector<16x128xf32>
    %19 = arith.addf %17, %18 : vector<16x128xf32>
    %cst_16 = arith.constant 0.000000e+00 : f32
    %20 = vector.broadcast %cst_16 : f32 to vector<16x128xf32>
    %21 = arith.maximumf %19, %20 : vector<16x128xf32>
    %22 = arith.truncf %21 : vector<16x128xf32> to vector<16x128xbf16>
    %c0_17 = arith.constant 0 : index
    %c0_18 = arith.constant 0 : index
    %c0_19 = arith.constant 0 : index
    %23 = vector.load %arg7[%c0_17, %c0_18, %c0_19] : memref<1x128x128xbf16, #tpu.memory_space<vmem>>, vector<1x128x128xbf16>
    %24 = vector.shape_cast %23 : vector<1x128x128xbf16> to vector<128x128xbf16>
    %c0_20 = arith.constant 0 : index
    %c0_21 = arith.constant 0 : index
    %c0_22 = arith.constant 0 : index
    %25 = vector.load %arg8[%c0_20, %c0_21, %c0_22] : memref<1x1x128xf32, #tpu.memory_space<vmem>>, vector<1x1x128xf32>
    %26 = vector.shape_cast %25 : vector<1x1x128xf32> to vector<1x128xf32>
    %cst_23 = arith.constant dense<0.000000e+00> : vector<16x128xf32>
    %27 = tpu.matmul %22, %24, %cst_23 {dimension_numbers = #tpu.dot_dimension_numbers<[1], [0], [0], [1], [0, 0, 1, 1], [], []>} : vector<16x128xbf16>, vector<128x128xbf16>, vector<16x128xf32> -> vector<16x128xf32>
    %28 = vector.broadcast %26 : vector<1x128xf32> to vector<16x128xf32>
    %29 = arith.addf %27, %28 : vector<16x128xf32>
    %c0_24 = arith.constant 0 : index
    %c0_25 = arith.constant 0 : index
    %c0_26 = arith.constant 0 : index
    %30 = vector.load %arg9[%c0_24, %c0_25, %c0_26] : memref<1x16x128xf32, #tpu.memory_space<vmem>>, vector<1x16x128xf32>
    %31 = vector.shape_cast %30 : vector<1x16x128xf32> to vector<16x128xf32>
    %32 = vector.shape_cast %29 : vector<16x128xf32> to vector<1x16x128xf32>
    tpu.vector_store %arg9[%c0_24, %c0_25, %c0_26], %32 {strides = array<i32>} : memref<1x16x128xf32, #tpu.memory_space<vmem>>, vector<1x16x128xf32>,
    return
  }
  func.func @transform_0(%arg0: i32, %arg1: i32) -> (i32, i32, i32) {
    %c0_i32 = arith.constant 0 : i32
    %c0_i32_0 = arith.constant 0 : i32
    return %arg0, %arg1, %c0_i32 : i32, i32, i32
  }
  func.func @transform_1(%arg0: i32, %arg1: i32) -> (i32, i32, i32) {
    %c0_i32 = arith.constant 0 : i32
    %c0_i32_0 = arith.constant 0 : i32
    %c0_i32_1 = arith.constant 0 : i32
    return %arg0, %c0_i32, %c0_i32_0 : i32, i32, i32
  }
  func.func @transform_2(%arg0: i32, %arg1: i32) -> (i32, i32, i32) {
    %c0_i32 = arith.constant 0 : i32
    %c0_i32_0 = arith.constant 0 : i32
    %c0_i32_1 = arith.constant 0 : i32
    return %arg0, %c0_i32, %c0_i32_0 : i32, i32, i32
  }
  func.func @transform_3(%arg0: i32, %arg1: i32) -> (i32, i32, i32) {
    %c0_i32 = arith.constant 0 : i32
    %c0_i32_0 = arith.constant 0 : i32
    %c0_i32_1 = arith.constant 0 : i32
    return %arg0, %c0_i32, %c0_i32_0 : i32, i32, i32
  }
  func.func @transform_4(%arg0: i32, %arg1: i32) -> (i32, i32, i32) {
    %c0_i32 = arith.constant 0 : i32
    %c0_i32_0 = arith.constant 0 : i32
    %c0_i32_1 = arith.constant 0 : i32
    return %arg0, %c0_i32, %c0_i32_0 : i32, i32, i32
  }
  func.func @transform_5(%arg0: i32, %arg1: i32) -> (i32, i32, i32) {
    %c0_i32 = arith.constant 0 : i32
    %c0_i32_0 = arith.constant 0 : i32
    %c0_i32_1 = arith.constant 0 : i32
    return %arg0, %c0_i32, %c0_i32_0 : i32, i32, i32
  }
  func.func @transform_6(%arg0: i32, %arg1: i32) -> (i32, i32, i32) {
    %c0_i32 = arith.constant 0 : i32
    %c0_i32_0 = arith.constant 0 : i32
    %c0_i32_1 = arith.constant 0 : i32
    return %arg0, %c0_i32, %c0_i32_0 : i32, i32, i32
  }
  func.func @transform_7(%arg0: i32, %arg1: i32) -> (i32, i32, i32) {
    %c0_i32 = arith.constant 0 : i32
    %c0_i32_0 = arith.constant 0 : i32
    return %arg0, %arg1, %c0_i32 : i32, i32, i32
  }
}

</mosaic_0001>

<bundles_post_ra>
// kernel: tpu_custom_call.1
= control target key start
LH: loop header
LB: loop body
LE: loop exit
PB: predicated region body
PF: predicated region fallthrough
CT: control target
= control target key end

     0   :  { %s1744_s0 = inlined_call_operand.hbm [shape: f32[4,16,32], index: 0, kind: input, shape index: {}]   ;;  %s1745_s1 = inlined_call_operand.hbm [shape: bf16[4,32,128], index: 1, kind: input, shape index: {}]   ;;  %s1746_s2 = inlined_call_operand.hbm [shape: f32[4,1,128], index: 2, kind: input, shape index: {}]   ;;  %s1747_s3 = inlined_call_operand.hbm [shape: bf16[4,128,128], index: 3, kind: input, shape index: {}]   ;;  %s1748_s4 = inlined_call_operand.hbm [shape: f32[4,1,128], index: 4, kind: input, shape index: {}]   ;;  %s1749_s5 = inlined_call_operand.hbm [shape: bf16[4,128,128], index: 5, kind: input, shape index: {}]   ;;  %s1750_s6 = inlined_call_operand.vmem [shape: f32[4,1,128], index: 6, kind: input, shape index: {}]   ;;  %s1751_s7 = inlined_call_operand.hbm [shape: f32[4,16,128], index: 7, kind: output, shape index: {}]  }
   0x1   :  { %1766 = sst [smem:[#allocation26_spill]] %s1745_s1 }
   0x2   :  { %1767 = sst [smem:[#allocation27_spill]] %s1747_s3 }
   0x3   :  { %12 = vsyncpa [#allocation3], 0 }
   0x4   :  { %14 = vsyncpa [#allocation3 + $0x1], 0 }
   0x5   :  { %15 = vsyncpa [#allocation6], 0 }
   0x6   :  { %17 = vsyncpa [#allocation6 + $0x1], 0 }
   0x7   :  { %18 = vsyncpa [#allocation9], 0 }
   0x8   :  { %20 = vsyncpa [#allocation9 + $0x1], 0 }
   0x9   :  { %21 = vsyncpa [#allocation12], 0 }
   0xa   :  { %23 = vsyncpa [#allocation12 + $0x1], 0 }
   0xb   :  { %24 = vsyncpa [#allocation4], 0 }
   0xc   :  { %26 = vsyncpa [#allocation4 + $0x1], 0  ;;  %s1493_s24 = smov 0   ;;  %s1495_s25 = smov 0  }
   0xd   :  { %s1497_s26 = smov 0   ;;  %s1499_s27 = smov 0  }
   0xe   :  { %s1501_s28 = smov 0   ;;  %s1503_s29 = smov 0  }
   0xf LB: > { %1768 = sst [smem:[#allocation19_spill]] %s1425_s24  ;;  %s1524_s30 = sadd.s32 4294967295, %s1445_s29   ;;  %s1445_s29 = sphi %s1503_s29, %s32_s29   ;;  %s1441_s28 = sphi %s1501_s28, %s1799_s28   ;;  %s1437_s27 = sphi %s1499_s27, %s1798_s27   ;;  %s1433_s26 = sphi %s1497_s26, %s1794_s26   ;;  %s1429_s25 = sphi %s1495_s25, %s1797_s25   ;;  %s1425_s24 = sphi %s1493_s24, %s1796_s24  }
  0x10   : > { %1769 = sst [smem:[#allocation20_spill]] %s1433_s26  ;;  %s953_s8 = sadd.s32 4294967294, %s1445_s29  }
  0x11   : > { %1770 = sst [smem:[#allocation21_spill]] %s1445_s29  ;;  %s44_s9 = sadd.s32 1, %s1441_s28 }
  0x12   : > { %s53_s10 = sadd.s32 1, %s1433_s26  ;;  %p46_p0 = scmp.ge.s32.totalorder %s44_s9, 4 }
  0x13   : > { %p60_p1 = scmp.ne.s32.totalorder %s1433_s26, %s1429_s25  ;;  %p61_p2 = scmp.eq.s32.totalorder %s1445_s29, 0 }
  0x14   : > { %p66_p3 = scmp.ne.s32.totalorder %s1429_s25, %s1425_s24  ;;  %s1801_s9 = smov (%p46_p0, %s44_s9), 0 }
  0x15   : > { %1771 = sst [smem:[#allocation22_spill]] %s1801_s9  ;;  %p1536_p4 = por %p61_p2, %p60_p1 }
  0x16   : > { %p67_p5 = scmp.eq.s32.totalorder %s1524_s30, 0  ;;  %s48_s12 = ssub.s32 %s1441_s28, %s1801_s9 }
  0x17   : > { %p248_p6 = scmp.eq.s32.totalorder %s1524_s30, 3  ;;  %p51_p7 = scmp.eq.s32.totalorder %s48_s12, 0 }
  0x18   : > { %p1544_p8 = por %p67_p5, %p66_p3  ;;  %p254_p10 = scmp.eq.s32.totalorder %s953_s8, 3 }
  0x19   : > { %p1548_p9 = por %p248_p6, %p60_p1  ;;  %p1112_p12 = scmp.lt.s32.totalorder %s1445_s29, 4 }
  0x1a   : > { %s1553_s15 = scalar_select %p51_p7, %s1433_s26, %s53_s10  }
  0x1b   : > { %s1774_s14 = scalar_select %p1548_p9, 1, 0 }
  0x1c   : > { %1776 = sst [smem:[#allocation24_spill]] %s1553_s15  ;;  %p1555_p11 = por %p254_p10, %p66_p3 }
  0x1d   : > { %1775 = sst [smem:[#allocation23_spill]] %s1774_s14  ;;  %s1561_s17 = sand.u32 1, %s1433_s26  }
  0x1e   : > { %s1777_s16 = scalar_select %p1555_p11, 1, 0 }
  0x1f   : > { %s1754_s18 = sshll.u32 %s1561_s17, 4  ;;  %s1755_s19 = sshll.u32 %s1441_s28, 4 }
  0x20   : > { %1778 = sst [smem:[#allocation25_spill]] %s1777_s16  ;;  %p1567_p13 = pnand %p1112_p12, %p1536_p4 }
  0x21   : > { %s298_s21 = sand.u32 1, %s1445_s29   ;;  %s1780_s1 = sld [smem:[#allocation26_spill]] }
  0x22   : > { %s302_s12 = scalar_lea.vmem [#allocation5], %s1754_s18  ;;  %s1579_s11 = scalar_lea.sflag [#allocation6], %s298_s21 }
  0x23   : > { %s310_s9 = sshll.u32 %s302_s12, 4  ;;  %s1764_s15 = smov 64   ;;  %s311_s9 = int_to_ptr.vmem [resolvable:$true] %s310_s9 }
  0x24   : > { %s1765_s26 = smov 4   ;;  %p968_p0 = scmp.ge.s32.totalorder %s1445_s29, 1 }
  0x25   : > { %p402_p1 = scmp.lt.s32.totalorder %s1445_s29, 5  ;;  %s1758_s22 = sshll.u32 %s1561_s17, 6 }
  0x26   : > { %s341_s12 = scalar_lea.vmem [#allocation8], %s1758_s22  ;;  %s1782_s3 = sld [smem:[#allocation27_spill]] }
  0x27   : > { %s307_s8 = scalar_lea.hbm %s1780_s1, %s1755_s19  ;;  %p1590_p2 = pnand %p968_p0, %p402_p1 }
  0x28   : > { %s308_s10 = sshll.u32 %s307_s8, 4  ;;  %s1763_s8 = sshll.u32 %s1441_s28, 6  ;;  %s309_s10 = int_to_ptr.hbm [resolvable:$true] %s308_s10 }
  0x29   : > { %1095 = dma.hbm_to_vmem [thread:$0]  (!%p1567_p13), %s309_s10, 256, %s311_s9, %s1579_s11, %s1764_s15, %s1764_s15, %s1765_s26  }
  0x2a   : > { %s349_s18 = sshll.u32 %s341_s12, 4  ;;  %s338_s10 = scalar_lea.sflag [#allocation9], %s298_s21  ;;  %s350_s18 = int_to_ptr.vmem [resolvable:$true] %s349_s18 }
  0x2b   : > { %s1783_s24 = sshll.u32 %s1441_s28, 4  ;;  %s1784_s14 = sshll.u32 %s1561_s17, 4 }
  0x2c   : > { %s346_s16 = scalar_lea.hbm %s1782_s3, %s1763_s8  ;;  %s285_s29 = scalar_lea.hbm %s1744_s0, %s1783_s24 }
  0x2d   : > { %s347_s9 = sshll.u32 %s346_s16, 4  ;;  %s278_s1 = scalar_lea.vmem [#allocation2], %s1784_s14  ;;  %s348_s9 = int_to_ptr.hbm [resolvable:$true] %s347_s9 }
  0x2e   : > { %1101 = dma.hbm_to_vmem [thread:$0]  (!%p1567_p13), %s348_s9, 1024, %s350_s18, %s338_s10, %s1764_s15, %s1764_s15, %s1765_s26  }
  0x2f   : > { %s288_s19 = sshll.u32 %s278_s1, 4  ;;  %s286_s16 = sshll.u32 %s285_s29, 4  ;;  %s289_s19 = int_to_ptr.vmem [resolvable:$true] %s288_s19  ;;  %s287_s16 = int_to_ptr.hbm [resolvable:$true] %s286_s16 }
  0x30   : > { %s275_s21 = scalar_lea.sflag [#allocation3], %s1561_s17  ;;  %s1449_s8 = smov 128  }
  0x31   : > { %s1450_s3 = smov 8   ;;  %s326_s24 = scalar_lea.hbm %s1746_s2, %s1441_s28 }
  0x32   : > { %1092 = dma.hbm_to_vmem [thread:$0]  (!%p1567_p13), %s287_s16, 256, %s289_s19, %s275_s21, %s1449_s8, %s1449_s8, %s1450_s3  }
  0x33   : > { %s323_s9 = scalar_lea.vmem [#allocation7], %s1561_s17  ;;  %s328_s12 = sshll.u32 %s326_s24, 4  ;;  %s329_s12 = int_to_ptr.hbm [resolvable:$true] %s328_s12 }
  0x34   : > { %s330_s14 = sshll.u32 %s323_s9, 4  ;;  %s365_s15 = scalar_lea.hbm %s1748_s4, %s1441_s28  ;;  %s331_s14 = int_to_ptr.vmem [resolvable:$true] %s330_s14 }
  0x35   : > { %1098 = dma.hbm_to_vmem [thread:$0]  (!%p1567_p13), %s329_s12, 16, %s331_s14, %s1579_s11  }
  0x36   : > { %s362_s26 = scalar_lea.vmem [#allocation10], %s1561_s17  ;;  %s367_s8 = sshll.u32 %s365_s15, 4  ;;  %s368_s8 = int_to_ptr.hbm [resolvable:$true] %s367_s8 }
  0x37   : > { %s369_s3 = sshll.u32 %s362_s26, 4  ;;  %s1785_s19 = sshll.u32 %s1441_s28, 6  ;;  %s370_s3 = int_to_ptr.vmem [resolvable:$true] %s369_s3 }
  0x38   : > { %1104 = dma.hbm_to_vmem [thread:$0]  (!%p1567_p13), %s368_s8, 16, %s370_s3, %s338_s10  }
  0x39   : > { %s385_s18 = scalar_lea.hbm %s1749_s5, %s1785_s19  ;;  %s1786_s24 = sshll.u32 %s1561_s17, 6 }
  0x3a   : > { %s386_s22 = sshll.u32 %s385_s18, 4  ;;  %s380_s9 = scalar_lea.vmem [#allocation11], %s1786_s24  ;;  %s387_s22 = int_to_ptr.hbm [resolvable:$true] %s386_s22 }
  0x3b   : > { %s388_s11 = sshll.u32 %s380_s9, 4  ;;  %s377_s14 = scalar_lea.sflag [#allocation12], %s1561_s17  ;;  %s389_s11 = int_to_ptr.vmem [resolvable:$true] %s388_s11 }
  0x3c   : > { %s1787_s12 = smov 4   ;;  %s1788_s26 = smov 64  }
  0x3d   : > { %1107 = dma.hbm_to_vmem [thread:$0]  (!%p1567_p13), %s387_s22, 1024, %s389_s11, %s377_s14, %s1788_s26, %s1788_s26, %s1787_s12  }
  0x3e   : > { %406 = sbr.rel (%p1590_p2) target bundleno = 511 (0x1ff), region = 48  ;;  %s1648_s15 = sand.u32 (!%p1590_p2), 1, %s1429_s25  }
  0x3f   : > { %s1651_s10 = sshll.u32 (!%p1590_p2), %s1648_s15, 4  ;;  %s409_s29 = scalar_lea.sflag (!%p1590_p2), [#allocation3], %s1648_s15 }
  0x40   : > { %s412_s1 = scalar_lea.vmem (!%p1590_p2), [#allocation2], %s1651_s10 }
  0x43   : > { %1404 = dma.done.wait (%p1544_p8), %s409_s29, 256  }
  0x44   : > { %1406 = vsyncadd (%p1544_p8), %s409_s29, 4294967040  ;;  %s418_s17 = sand.u32 1, %s1524_s30   ;;  %s422_s23 = scalar_lea.vmem [#allocation5], %s1651_s10 }
  0x45   : > { %s419_s20 = scalar_lea.sflag [#allocation6], %s418_s17 }
  0x46   : > { %1408 = dma.done.wait (%p1544_p8), %s419_s20, 272  }
  0x47   : > { %1410 = vsyncadd (%p1544_p8), %s419_s20, 4294967024  ;;  %s971_s3 = sshll.u32 %s1648_s15, 6  ;;  %s431_s8 = scalar_lea.vmem [#allocation7], %s1648_s15 }
  0x48   : > { %s438_s19 = scalar_lea.sflag [#allocation9], %s418_s17  ;;  %s1667_s16 = scalar_lea.vmem [#allocation8], %s971_s3 }
  0x49   : > { %1412 = dma.done.wait (%p1544_p8), %s438_s19, 1040  }
  0x4a   : > { %1414 = vsyncadd (%p1544_p8), %s438_s19, 4294966256  ;;  %s450_s30 = scalar_lea.vmem [#allocation10], %s1648_s15  ;;  %s457_s21 = scalar_lea.sflag [#allocation12], %s1648_s15 }
  0x4b   : > { %s1675_s18 = scalar_lea.vmem [#allocation11], %s971_s3 }
  0x4c   : > { %1416 = dma.done.wait (%p1544_p8), %s457_s21, 1024  }
  0x4d   : > { %1418 = vsyncadd (%p1544_p8), %s457_s21, 4294966272  ;;  %v1057_v0 = vld [vmem:[%s422_s23 + $0x8] sm:$0xff]  ;;  %v1056_v1 = vld [vmem:[%s422_s23] sm:$0xff]  ;;  %vm547_vm0 = vcmask 261120   ;;  %p519_p3 = scmp.lt.s32.totalorder %s1437_s27, 3  ;;  %s1074_s11 = sshll.u32 %s1437_s27, 4 }
  0x4e   : > { %v1065_v2 = vld [vmem:[%s1667_s16 + $0x38] sm:$0xff]  ;;  %557 = vmatpush.bf16.msra.mxu0 %v1057_v0  ;;  %v1064_v5 = vld [vmem:[%s1667_s16 + $0x30] sm:$0xff]  ;;  %v1063_v7 = vld [vmem:[%s1667_s16 + $0x28] sm:$0xff]  ;;  %s751_s29 = scalar_lea.hbm %s1751_s7, %s1074_s11  ;;  %s738_s23 = scalar_lea.sflag [#allocation4], %s1648_s15 }
  0x4f   : > { %v524_v3 = vld [vmem:[%s412_s1] sm:$0xff]  ;;  %v525_v4 = vld [vmem:[%s412_s1 + $0x8] sm:$0xff]  ;;  %636 = vmatpush.bf16.msra.mxu1 %v1065_v2  ;;  %s520_s13 = scalar_select %p519_p3, %s1437_s27, 3 }
  0x50   : > { %v526_v6 = vpack.c.bf16 %v525_v4, %v524_v3  ;;  %v1062_v8 = vld [vmem:[%s1667_s16 + $0x20] sm:$0xff]  ;;  %v1061_v9 = vld [vmem:[%s1667_s16 + $0x18] sm:$0xff]  ;;  %v1060_v10 = vld [vmem:[%s1667_s16 + $0x10] sm:$0xff]  ;;  %s517_s1 = scalar_lea.vmem [#allocation13], %s1651_s10  ;;  %s754_s20 = sshll.u32 %s751_s29, 4  ;;  %s755_s20 = int_to_ptr.hbm [resolvable:$true] %s754_s20 }
  0x51   : > { %v1059_v11 = vld [vmem:[%s1667_s16 + $0x8] sm:$0xff]  ;;  %v1058_v12 = vld [vmem:[%s1667_s16] sm:$0xff]  ;;  %v1072_v14 = vld [vmem:[%s1675_s18 + $0x30] sm:$0xff]  ;;  %s521_s9 = scalar_lea.vmem %s1750_s6, %s520_s13  ;;  %s752_s17 = sshll.u32 %s517_s1, 4  ;;  %s753_s17 = int_to_ptr.vmem [resolvable:$true] %s752_s17 }
  0x52   : > { %558 = vmatpush.bf16.msra.mxu0 %v1056_v1  ;;  %v1073_v13 = vld [vmem:[%s1675_s18 + $0x38] sm:$0xff]  ;;  %v1071_v15 = vld [vmem:[%s1675_s18 + $0x28] sm:$0xff]  ;;  %v1070_v16 = vld [vmem:[%s1675_s18 + $0x20] sm:$0xff]  ;;  %s1365_s3 = sshra.s32 %s755_s20, 4  ;;  %s1371_s10 = scalar_lea.hbm %s1751_s7, 64  ;;  %s1366_s3 = int_to_ptr.hbm [resolvable:$true] %s1365_s3 }
  0x53   : > { %637 = vmatpush.bf16.msra.mxu1 %v1064_v5  ;;  %721 = vmatpush.bf16.msra.mxu2 %v1073_v13  ;;  %v1168_v18 = vld [vmem:[%s431_s8] ss:$0 sm:$0xff]  ;;  %v1068_v26 = vld [vmem:[%s1675_s18 + $0x10] sm:$0xff]  ;;  %v1067_v27 = vld [vmem:[%s1675_s18 + $0x8] sm:$0xff]  ;;  %s1367_s27 = scalar_lea.hbm %s1366_s3, 16  ;;  %p1372_p7 = scmp.lt.s32.totalorder %s1366_s3, %s1751_s7 }
  0x54   : > { %v1069_v25 = vld [vmem:[%s1675_s18 + $0x18] sm:$0xff]  ;;  %v1066_v28 = vld [vmem:[%s1675_s18] sm:$0xff]  ;;  %p1368_p4 = scmp.ne.s32.totalorder %s1366_s3, %s1367_s27  ;;  %p1373_p8 = scmp.lt.s32.totalorder %s1371_s10, %s1367_s27 }
  0x55   : > { %982 = vmatmul.msk.bf16.vlgmr.msra.gmra.mxu0 %vm547_vm0, %v526_v6  ;;  %v1169_v30 = vld [vmem:[%s450_s30] ss:$0 sm:$0xff] }
  0x56   : > { %v1170_v37 = vld [vmem:[%s521_s9] ss:$0 sm:$0xff]  ;;  %p1369_p5 = pnand %p1368_p4, %p1548_p9  ;;  %p1374_p10 = por %p1373_p8, %p1372_p7 }
  0x57   : > { %638 = vmatpush.bf16.msra.mxu1 %v1063_v7  ;;  %722 = vmatpush.bf16.msra.mxu2 %v1072_v14 }
  0x58   : > { %p1370_p6 = pneg %p1369_p5 }
  0x5a   : > { %p1375_p12 = pnand %p1374_p10, %p1370_p6 }
  0x5b   : > { %639 = vmatpush.bf16.msra.mxu1 %v1062_v8  ;;  %723 = vmatpush.bf16.msra.mxu2 %v1071_v15 }
  0x5f   : > { %640 = vmatpush.bf16.msra.mxu1 %v1061_v9  ;;  %724 = vmatpush.bf16.msra.mxu2 %v1070_v16 }
  0x63   : > { %641 = vmatpush.bf16.msra.mxu1 %v1060_v10  ;;  %725 = vmatpush.bf16.msra.mxu2 %v1069_v25 }
  0x67   : > { %642 = vmatpush.bf16.msra.mxu1 %v1059_v11  ;;  %726 = vmatpush.bf16.msra.mxu2 %v1068_v26 }
  0x6b   : > { %643 = vmatpush.bf16.msra.mxu1 %v1058_v12  ;;  %727 = vmatpush.bf16.msra.mxu2 %v1067_v27 }
  0x6f   : > { %728 = vmatpush.bf16.msra.mxu2 %v1066_v28 }
  0xd2   : > { %v560_v17 = vpop.f32.mrf.mxu0 }
  0xd3   : > { %v561_v19 = vadd.f32 %v1168_v18, %v560_v17 }
  0xd5   : > { %v565_v22 = vmax.f32 %v561_v19, 0.0 }
  0xda   : > { %v562_v20 = vpop.f32.mrf.mxu0 }
  0xdb   : > { %v563_v21 = vadd.f32 %v1168_v18, %v562_v20 }
  0xdd   : > { %v566_v23 = vmax.f32 %v563_v21, 0.0 }
  0xdf   : > { %v567_v24 = vpack.c.bf16 %v566_v23, %v565_v22 }
  0xe1   : > { %644 = vmatmul.bf16.vlgmr.msra.gmra.mxu1 %v567_v24 }
 0x15e   : > { %v645_v29 = vpop.f32.mrf.mxu1 }
 0x15f   : > { %v646_v31 = vadd.f32 %v1169_v30, %v645_v29 }
 0x161   : > { %v650_v34 = vmax.f32 %v646_v31, 0.0 }
 0x166   : > { %v647_v32 = vpop.f32.mrf.mxu1 }
 0x167   : > { %v648_v33 = vadd.f32 %v1169_v30, %v647_v32 }
 0x169   : > { %v651_v35 = vmax.f32 %v648_v33, 0.0 }
 0x16b   : > { %v652_v36 = vpack.c.bf16 %v651_v35, %v650_v34 }
 0x16d   : > { %729 = vmatmul.bf16.vlgmr.msra.gmra.mxu2 %v652_v36 }
 0x1f0   : > { %v730_v38 = vpop.f32.mrf.mxu2 }
 0x1f1   : > { %v731_v39 = vadd.f32 %v1170_v37, %v730_v38 }
 0x1f3   : > { %735 = vst [vmem:[%s517_s1] sm:$0xff] %v731_v39 }
 0x1f8   : > { %v732_v40 = vpop.f32.mrf.mxu2 }
 0x1f9   : > { %v733_v41 = vadd.f32 %v1170_v37, %v732_v40 }
 0x1fb   : > { %736 = vst [vmem:[%s517_s1 + $0x8] sm:$0xff] %v733_v41 }
 0x1fc   : > { %1378 = shalt.err (!%p1375_p12)
}
 0x1fd   : > { %s1451_s15 = smov 128   ;;  %s1452_s21 = smov 8  }
 0x1fe   : > { %1087 = dma.vmem_to_hbm [thread:$0]  (%p1548_p9), %s753_s17, 256, %s755_s20, %s738_s23, %s1451_s15, %s1451_s15, %s1452_s21  }
 0x1ff PF: > { %s1790_s18 = sld [smem:[#allocation21_spill]] }
 0x200   : > { %s1791_s13 = sld [smem:[#allocation19_spill]] }
 0x205   : > { %p1113_p13 = scmp.ge.s32.totalorder %s1790_s18, 2 }
 0x206   : > { %s769_s24 = sand.u32 1, %s1791_s13  }
 0x207   : > { %p1109_p0 = pnand %p1113_p13, %p1555_p11  ;;  %s770_s9 = scalar_lea.sflag [#allocation4], %s769_s24 }
 0x209   : > { %p1110_p1 = pneg %p1109_p0 }
 0x20b   : > { %1420 = dma.done.wait (%p1110_p1), %s770_s9, 256  }
 0x20c   : > { %1422 = vsyncadd (%p1110_p1), %s770_s9, 4294967040  ;;  %s32_s29 = sadd.s32 1, %s1790_s18   ;;  %s1793_s11 = sld [smem:[#allocation20_spill]] }
 0x20d   : > { %p29_p2 = scmp.ge.s32.totalorder %s32_s29, 6   ;;  %s1794_s26 = sld [smem:[#allocation24_spill]] }
 0x20e   : > { %s1795_s14 = sld [smem:[#allocation22_spill]]  ;;  %s1796_s24 = smov %s1429_s25 }
 0x20f   : > { %s1798_s27 = smov %s1441_s28 }
 0x210   :  { %31 = sbr.rel (!%p29_p2) target bundleno = 15 (0xf), region = 157 }
 0x212   : > { %s1797_s25 = smov %s1793_s11 }
 0x214   : > { %s1799_s28 = smov %s1795_s14 }
 0x215   :  { %776 = vsyncpa [#allocation3], 1 }
 0x216   :  { %778 = vsyncpa [#allocation3 + $0x1], 1 }
 0x217   :  { %779 = vsyncpa [#allocation6], 1 }
 0x218   :  { %781 = vsyncpa [#allocation6 + $0x1], 1 }
 0x219   :  { %782 = vsyncpa [#allocation9], 1 }
 0x21a   :  { %784 = vsyncpa [#allocation9 + $0x1], 1 }
 0x21b   :  { %785 = vsyncpa [#allocation12], 1 }
 0x21c   :  { %787 = vsyncpa [#allocation12 + $0x1], 1 }
 0x21d   :  { %788 = vsyncpa [#allocation4], 1 }
 0x21e   :  { %790 = vsyncpa [#allocation4 + $0x1], 1 }

</bundles_post_ra>
